<compile_context>
chip_gen: v7x
topology: tpu7x:2x2x1
jax: 0.10.0
libtpu: 0.0.40
codegen_flags: <defaults>
</compile_context>

<pallas_src>
import functools

import jax
import jax.numpy as jnp
from jax.experimental import pallas as pl
from jax.experimental.pallas import tpu as pltpu


def _amc_loss_kernel(emb_ref, logits_ref, labels_ref, out_ref, acc_ref, *,
                     n_total, half, tile, angular_margin, lambda_):
    f32 = jnp.float32
    step = pl.program_id(0)
    last = pl.num_programs(0) - 1

    @pl.when(step == 0)
    def _init():
        for i in range(5):
            acc_ref[i] = f32(0.0)

    # Valid-row mask for this (possibly partial) tile of pairs.
    rows = step * tile + jax.lax.broadcasted_iota(jnp.int32, (tile, 1), 0)
    mask = rows < half                                   # (tile, 1) bool

    labels = labels_ref[...]                             # (2, tile, 1) int32

    # ---------------- cross entropy partial sum (both halves) ----------------
    ce_part = f32(0.0)
    for h in range(2):                                   # unrolled, 2 halves
        lg = logits_ref[h].astype(f32)                   # (tile, C)
        c = lg.shape[-1]
        m = jnp.max(lg, axis=-1, keepdims=True)          # (tile, 1)
        shifted = lg - m
        sumexp = jnp.sum(jnp.exp(shifted), axis=-1, keepdims=True)
        class_ids = jax.lax.broadcasted_iota(jnp.int32, (tile, c), 1)
        # picked logit fused into the shifted pass (no one-hot f32 temporary)
        picked = jnp.sum(jnp.where(labels[h] == class_ids, shifted, 0.0),
                         axis=-1, keepdims=True)         # (tile, 1)
        ce_rows = jnp.log(sumexp) - picked               # lse - logit[label]
        ce_part = ce_part + jnp.sum(jnp.where(mask, ce_rows, 0.0))

    # ---------------- AMC partial sums on paired halves ----------------------
    e1 = emb_ref[0].astype(f32)                          # (tile, D)
    e2 = emb_ref[1].astype(f32)
    dot = jnp.sum(e1 * e2, axis=-1, keepdims=True)       # (tile, 1)
    s1 = jnp.sum(e1 * e1, axis=-1, keepdims=True)
    s2 = jnp.sum(e2 * e2, axis=-1, keepdims=True)
    # Equivalent to F.normalize(eps=1e-12) without the (N, D) divide pass.
    ip = dot * jax.lax.rsqrt(jnp.maximum(s1 * s2, 1e-24))
    ip = jnp.clip(ip, -1.0 + 1e-5, 1.0 - 1e-5)
    # arccos(x) == atan2(sqrt(1 - x^2), x) exactly on (-1, 1)
    geo = jnp.arctan2(jnp.sqrt(1.0 - ip * ip), ip)       # (tile, 1)

    pos_b = (labels[0] == labels[1]) & mask
    neg_b = (labels[0] != labels[1]) & mask
    hinge = jnp.maximum(angular_margin - geo, 0.0)

    acc_ref[0] = acc_ref[0] + ce_part
    acc_ref[1] = acc_ref[1] + jnp.sum(jnp.where(pos_b, geo * geo, 0.0))
    acc_ref[2] = acc_ref[2] + jnp.sum(jnp.where(neg_b, hinge * hinge, 0.0))
    acc_ref[3] = acc_ref[3] + jnp.sum(pos_b.astype(f32))
    acc_ref[4] = acc_ref[4] + jnp.sum(neg_b.astype(f32))

    @pl.when(step == last)
    def _finalize():
        ce = acc_ref[0] / f32(n_total)
        pos_cnt = acc_ref[3]
        neg_cnt = acc_ref[4]
        pos_loss = jnp.where(pos_cnt > 0.0,
                             acc_ref[1] / jnp.maximum(pos_cnt, 1.0), 0.0)
        neg_loss = jnp.where(neg_cnt > 0.0,
                             acc_ref[2] / jnp.maximum(neg_cnt, 1.0), 0.0)
        out_ref[0, 0] = ce + f32(lambda_) * (pos_loss + neg_loss)


def _auto_tile_pairs(d, c, e_itemsize, l_itemsize, vmem_budget_bytes=12 << 20):
    """Largest pair-tile (multiple of 8, <= 1024) whose double-buffered working
    set for both halves of embeddings+logits+labels stays under the budget.
    Budget defaults to 12 MiB so it fits the 16 MiB v5e scoped-VMEM default
    with headroom (v6e/v7x default 32 MiB)."""
    lane = 128
    d_pad = ((d + lane - 1) // lane) * lane
    c_pad = ((c + lane - 1) // lane) * lane
    # per pair-row bytes resident per buffer (2 halves, labels lane-padded)
    row_bytes = 2 * (d_pad * e_itemsize + c_pad * l_itemsize + lane * 4)
    tile = vmem_budget_bytes // (2 * row_bytes)          # 2 = double buffering
    tile = max(8, min(int(tile), 1024))
    return (tile // 8) * 8


def amc_loss_with_pairing(embeddings, logits, labels, *,
                          angular_margin=0.5, lambda_=0.1, tile_pairs=None):
    """Pallas TPU implementation of AMCLossWithPairing.forward.

    tile_pairs: pairs processed per grid step.  Defaults to an auto-sized
    value that fills the scoped-VMEM budget (largest tile amortizes per-step
    overhead best for this HBM-bound kernel).
    """
    n, d = embeddings.shape
    n2, c = logits.shape
    assert n == n2 and labels.shape[0] == n
    assert n % 2 == 0, "AMC pairing requires an even batch size"
    half = n // 2

    itemsize_e = jnp.dtype(embeddings.dtype).itemsize
    itemsize_l = jnp.dtype(logits.dtype).itemsize
    if tile_pairs is None:
        tile_pairs = _auto_tile_pairs(d, c, itemsize_e, itemsize_l)

    # Pair split in the wrapper: leading dim of size 2 is zero-cost layout
    # plumbing (no unaligned sublane slices inside the kernel).
    emb_p = embeddings.reshape(2, half, d)
    log_p = logits.reshape(2, half, c)
    lab_p = labels.astype(jnp.int32).reshape(2, half, 1)

    # Tile must be a multiple of 8 (f32 sublane) unless it covers the whole
    # pair dimension; partial last tiles are masked in-kernel.
    if half <= tile_pairs:
        tile = half
    else:
        tile = max((tile_pairs // 8) * 8, 8)
    grid = (pl.cdiv(half, tile),)

    kernel = functools.partial(
        _amc_loss_kernel, n_total=n, half=half, tile=tile,
        angular_margin=float(angular_margin), lambda_=float(lambda_))

    cost = pl.CostEstimate(
        flops=int(5 * n * c + 8 * half * d),
        transcendentals=int(n * c + 4 * half),
        bytes_accessed=int(n * c * itemsize_l + n * d * itemsize_e + n * 4 + 4))

    out = pl.pallas_call(
        kernel,
        out_shape=jax.ShapeDtypeStruct((1, 1), jnp.float32),
        grid=grid,
        in_specs=[
            pl.BlockSpec((2, tile, d), lambda i: (0, i, 0)),   # embeddings
            pl.BlockSpec((2, tile, c), lambda i: (0, i, 0)),   # logits
            pl.BlockSpec((2, tile, 1), lambda i: (0, i, 0)),   # labels
        ],
        out_specs=pl.BlockSpec(memory_space=pltpu.MemorySpace.SMEM),
        scratch_shapes=[pltpu.SMEM((5,), jnp.float32)],
        compiler_params=pltpu.CompilerParams(
            dimension_semantics=("arbitrary",)),
        cost_estimate=cost,
    )(emb_p, log_p, lab_p)
    return out[0, 0]


def _reference_loss(embeddings, logits, labels, angular_margin=0.5, lambda_=0.1):
    emb = embeddings.astype(jnp.float32)
    logits = logits.astype(jnp.float32)
    norm = jnp.sqrt(jnp.sum(emb * emb, axis=1, keepdims=True))
    ne = emb / jnp.maximum(norm, 1e-12)
    half = emb.shape[0] // 2
    ip = jnp.sum(ne[:half] * ne[half:], axis=1)
    geo = jnp.arccos(jnp.clip(ip, -1.0 + 1e-5, 1.0 - 1e-5))
    l1, l2 = labels[:half], labels[half:]
    pos = (l1 == l2)
    neg = ~pos
    pos_loss = jnp.where(pos.sum() > 0,
                         (pos * geo ** 2).sum() / jnp.maximum(pos.sum(), 1),
                         0.0)
    neg_loss = jnp.where(
        neg.sum() > 0,
        (neg * jnp.maximum(angular_margin - geo, 0.0) ** 2).sum()
        / jnp.maximum(neg.sum(), 1),
        0.0)
    amc = pos_loss + neg_loss
    lse = jax.nn.logsumexp(logits, axis=1)
    picked = jnp.take_along_axis(logits, labels[:, None], axis=1)[:, 0]
    ce = jnp.mean(lse - picked)
    return ce + lambda_ * amc


if __name__ == "__main__":
    key = jax.random.PRNGKey(0)

    # ---- small single-tile case (grid = 1, auto tile covers the half) ----
    k1, k2, k3 = jax.random.split(key, 3)
    N, D, C = 8, 32, 16
    embeddings = jax.random.normal(k1, (N, D), jnp.float32)
    logits = jax.random.normal(k2, (N, C), jnp.float32)
    labels = jax.random.randint(k3, (N,), 0, C, jnp.int32)
    labels = labels.at[N // 2].set(labels[0])          # ensure a positive pair

    loss = amc_loss_with_pairing(embeddings, logits, labels,
                                 angular_margin=0.5, lambda_=0.1)
    loss = jax.block_until_ready(loss)
    ref = _reference_loss(embeddings, logits, labels, 0.5, 0.1)
    assert jnp.allclose(loss, ref, atol=1e-5, rtol=1e-5), (loss, ref)

    # ---- multi-step grid with a masked partial last tile ----
    k4, k5, k6 = jax.random.split(jax.random.PRNGKey(1), 3)
    N2 = 52                                            # half = 26, tile = 8 -> 4 steps
    embeddings2 = jax.random.normal(k4, (N2, D), jnp.float32)
    logits2 = jax.random.normal(k5, (N2, C), jnp.float32)
    labels2 = jax.random.randint(k6, (N2,), 0, C, jnp.int32)
    labels2 = labels2.at[N2 // 2].set(labels2[0])                  # positive pair
    labels2 = labels2.at[N2 // 2 + 1].set((labels2[1] + 1) % C)    # negative pair

    loss2 = amc_loss_with_pairing(embeddings2, logits2, labels2,
                                  angular_margin=0.5, lambda_=0.1, tile_pairs=8)
    loss2 = jax.block_until_ready(loss2)
    ref2 = _reference_loss(embeddings2, logits2, labels2, 0.5, 0.1)
    assert jnp.allclose(loss2, ref2, atol=1e-5, rtol=1e-5), (loss2, ref2)

    # ---- bf16 inputs pass through untouched (HBM traffic halved) ----
    loss3 = amc_loss_with_pairing(embeddings2.astype(jnp.bfloat16),
                                  logits2.astype(jnp.bfloat16), labels2)
    loss3 = jax.block_until_ready(loss3)
    ref3 = _reference_loss(embeddings2.astype(jnp.bfloat16),
                           logits2.astype(jnp.bfloat16), labels2, 0.5, 0.1)
    assert jnp.allclose(loss3, ref3, atol=2e-2, rtol=2e-2), (loss3, ref3)

    print("KERNEL_OK")
</pallas_src>

<mosaic_0001>
module attributes {stable_mosaic.version = 11 : i64} {
  func.func @_amc_loss_kernel(%arg0: i32, %arg1: memref<2x4x32xf32, #tpu.memory_space<vmem>>, %arg2: memref<2x4x16xf32, #tpu.memory_space<vmem>>, %arg3: memref<2x4x1xi32, #tpu.memory_space<vmem>>, %arg4: memref<1x1xf32, #tpu.memory_space<smem>>, %arg5: memref<5xf32, #tpu.memory_space<smem>>) attributes {dimension_semantics = [#tpu.dimension_semantics<arbitrary>], iteration_bounds = array<i64: 1>, scalar_prefetch = 0 : i64, scratch_operands = 1 : i64, tpu.core_type = #tpu.core_type<tc>, window_params = [{transform_indices = @transform_0, window_bounds = array<i64: 2, 4, 32>}, {transform_indices = @transform_1, window_bounds = array<i64: 2, 4, 16>}, {transform_indices = @transform_2, window_bounds = array<i64: 2, 4, 1>}, {transform_indices = @transform_3, window_bounds = array<i64: 1, 1>}]} {
    %c0_i32 = arith.constant 0 : i32
    %0 = arith.cmpi eq, %arg0, %c0_i32 : i32
    %1 = arith.extui %0 : i1 to i32
    %c0_i32_0 = arith.constant 0 : i32
    %2 = arith.cmpi ne, %1, %c0_i32_0 : i32
    scf.if %2 {
      %cst_51 = arith.constant 0.000000e+00 : f32
      %c0_52 = arith.constant 0 : index
      %151 = memref.load %arg5[%c0_52] : memref<5xf32, #tpu.memory_space<smem>>
      memref.store %cst_51, %arg5[%c0_52] : memref<5xf32, #tpu.memory_space<smem>>
      %cst_53 = arith.constant 0.000000e+00 : f32
      %c1_54 = arith.constant 1 : index
      %152 = memref.load %arg5[%c1_54] : memref<5xf32, #tpu.memory_space<smem>>
      memref.store %cst_53, %arg5[%c1_54] : memref<5xf32, #tpu.memory_space<smem>>
      %cst_55 = arith.constant 0.000000e+00 : f32
      %c2_56 = arith.constant 2 : index
      %153 = memref.load %arg5[%c2_56] : memref<5xf32, #tpu.memory_space<smem>>
      memref.store %cst_55, %arg5[%c2_56] : memref<5xf32, #tpu.memory_space<smem>>
      %cst_57 = arith.constant 0.000000e+00 : f32
      %c3_58 = arith.constant 3 : index
      %154 = memref.load %arg5[%c3_58] : memref<5xf32, #tpu.memory_space<smem>>
      memref.store %cst_57, %arg5[%c3_58] : memref<5xf32, #tpu.memory_space<smem>>
      %cst_59 = arith.constant 0.000000e+00 : f32
      %c4_60 = arith.constant 4 : index
      %155 = memref.load %arg5[%c4_60] : memref<5xf32, #tpu.memory_space<smem>>
      memref.store %cst_59, %arg5[%c4_60] : memref<5xf32, #tpu.memory_space<smem>>
    } else {
    }
    %c4_i32 = arith.constant 4 : i32
    %3 = arith.muli %arg0, %c4_i32 : i32
    %4 = tpu.iota {dimensions = array<i32: 0>} : vector<4x1xi32>
    %5 = vector.broadcast %3 : i32 to vector<4x1xi32>
    %6 = arith.addi %5, %4 : vector<4x1xi32>
    %c4_i32_1 = arith.constant 4 : i32
    %7 = vector.broadcast %c4_i32_1 : i32 to vector<4x1xi32>
    %8 = arith.cmpi slt, %6, %7 : vector<4x1xi32>
    %c0 = arith.constant 0 : index
    %c0_2 = arith.constant 0 : index
    %c0_3 = arith.constant 0 : index
    %9 = vector.load %arg3[%c0, %c0_2, %c0_3] : memref<2x4x1xi32, #tpu.memory_space<vmem>>, vector<2x4x1xi32>
    %c0_4 = arith.constant 0 : index
    %c0_5 = arith.constant 0 : index
    %c0_6 = arith.constant 0 : index
    %10 = vector.load %arg2[%c0_4, %c0_5, %c0_6] : memref<2x4x16xf32, #tpu.memory_space<vmem>>, vector<1x4x16xf32>
    %11 = vector.shape_cast %10 : vector<1x4x16xf32> to vector<4x16xf32>
    %cst = arith.constant dense<0xFF800000> : vector<4xf32>
    %12 = vector.multi_reduction <maximumf>, %11, %cst [1] : vector<4x16xf32> to vector<4xf32>
    %13 = vector.shape_cast %12 : vector<4xf32> to vector<4x1xf32>
    %14 = vector.broadcast %13 : vector<4x1xf32> to vector<4x16xf32>
    %15 = arith.subf %11, %14 : vector<4x16xf32>
    %16 = math.exp %15 : vector<4x16xf32>
    %cst_7 = arith.constant dense<0.000000e+00> : vector<4xf32>
    %17 = vector.multi_reduction <add>, %16, %cst_7 [1] : vector<4x16xf32> to vector<4xf32>
    %18 = vector.shape_cast %17 : vector<4xf32> to vector<4x1xf32>
    %19 = tpu.iota {dimensions = array<i32: 1>} : vector<4x16xi32>
    %20 = vector.extract_strided_slice %9 {offsets = [0, 0, 0], sizes = [1, 4, 1], strides = [1, 1, 1]} : vector<2x4x1xi32> to vector<1x4x1xi32>
    %21 = vector.shape_cast %20 : vector<1x4x1xi32> to vector<4x1xi32>
    %22 = vector.broadcast %21 : vector<4x1xi32> to vector<4x16xi32>
    %23 = arith.cmpi eq, %22, %19 : vector<4x16xi32>
    %cst_8 = arith.constant 0.000000e+00 : f32
    %24 = vector.broadcast %cst_8 : f32 to vector<4x16xf32>
    %25 = arith.select %23, %15, %24 : vector<4x16xi1>, vector<4x16xf32>
    %cst_9 = arith.constant dense<0.000000e+00> : vector<4xf32>
    %26 = vector.multi_reduction <add>, %25, %cst_9 [1] : vector<4x16xf32> to vector<4xf32>
    %27 = vector.shape_cast %26 : vector<4xf32> to vector<4x1xf32>
    %28 = math.log %18 : vector<4x1xf32>
    %29 = arith.subf %28, %27 : vector<4x1xf32>
    %cst_10 = arith.constant 0.000000e+00 : f32
    %30 = vector.broadcast %cst_10 : f32 to vector<4x1xf32>
    %31 = arith.select %8, %29, %30 : vector<4x1xi1>, vector<4x1xf32>
    %32 = vector.shape_cast %31 : vector<4x1xf32> to vector<1x4x1xf32>
    %cst_11 = arith.constant dense<0.000000e+00> : vector<1xf32>
    %33 = vector.multi_reduction <add>, %32, %cst_11 [1, 2] : vector<1x4x1xf32> to vector<1xf32>
    %34 = vector.shape_cast %33 : vector<1xf32> to vector<1x1x1xf32>
    %35 = vector.extract %34[0, 0, 0] : f32 from vector<1x1x1xf32>
    %cst_12 = arith.constant 0.000000e+00 : f32
    %36 = arith.addf %cst_12, %35 : f32
    %c1 = arith.constant 1 : index
    %c0_13 = arith.constant 0 : index
    %c0_14 = arith.constant 0 : index
    %37 = vector.load %arg2[%c1, %c0_13, %c0_14] : memref<2x4x16xf32, #tpu.memory_space<vmem>>, vector<1x4x16xf32>
    %38 = vector.shape_cast %37 : vector<1x4x16xf32> to vector<4x16xf32>
    %cst_15 = arith.constant dense<0xFF800000> : vector<4xf32>
    %39 = vector.multi_reduction <maximumf>, %38, %cst_15 [1] : vector<4x16xf32> to vector<4xf32>
    %40 = vector.shape_cast %39 : vector<4xf32> to vector<4x1xf32>
    %41 = vector.broadcast %40 : vector<4x1xf32> to vector<4x16xf32>
    %42 = arith.subf %38, %41 : vector<4x16xf32>
    %43 = math.exp %42 : vector<4x16xf32>
    %cst_16 = arith.constant dense<0.000000e+00> : vector<4xf32>
    %44 = vector.multi_reduction <add>, %43, %cst_16 [1] : vector<4x16xf32> to vector<4xf32>
    %45 = vector.shape_cast %44 : vector<4xf32> to vector<4x1xf32>
    %46 = tpu.iota {dimensions = array<i32: 1>} : vector<4x16xi32>
    %47 = vector.extract_strided_slice %9 {offsets = [1, 0, 0], sizes = [1, 4, 1], strides = [1, 1, 1]} : vector<2x4x1xi32> to vector<1x4x1xi32>
    %48 = vector.shape_cast %47 : vector<1x4x1xi32> to vector<4x1xi32>
    %49 = vector.broadcast %48 : vector<4x1xi32> to vector<4x16xi32>
    %50 = arith.cmpi eq, %49, %46 : vector<4x16xi32>
    %cst_17 = arith.constant 0.000000e+00 : f32
    %51 = vector.broadcast %cst_17 : f32 to vector<4x16xf32>
    %52 = arith.select %50, %42, %51 : vector<4x16xi1>, vector<4x16xf32>
    %cst_18 = arith.constant dense<0.000000e+00> : vector<4xf32>
    %53 = vector.multi_reduction <add>, %52, %cst_18 [1] : vector<4x16xf32> to vector<4xf32>
    %54 = vector.shape_cast %53 : vector<4xf32> to vector<4x1xf32>
    %55 = math.log %45 : vector<4x1xf32>
    %56 = arith.subf %55, %54 : vector<4x1xf32>
    %cst_19 = arith.constant 0.000000e+00 : f32
    %57 = vector.broadcast %cst_19 : f32 to vector<4x1xf32>
    %58 = arith.select %8, %56, %57 : vector<4x1xi1>, vector<4x1xf32>
    %59 = vector.shape_cast %58 : vector<4x1xf32> to vector<1x4x1xf32>
    %cst_20 = arith.constant dense<0.000000e+00> : vector<1xf32>
    %60 = vector.multi_reduction <add>, %59, %cst_20 [1, 2] : vector<1x4x1xf32> to vector<1xf32>
    %61 = vector.shape_cast %60 : vector<1xf32> to vector<1x1x1xf32>
    %62 = vector.extract %61[0, 0, 0] : f32 from vector<1x1x1xf32>
    %63 = arith.addf %36, %62 : f32
    %c0_21 = arith.constant 0 : index
    %c0_22 = arith.constant 0 : index
    %c0_23 = arith.constant 0 : index
    %64 = vector.load %arg1[%c0_21, %c0_22, %c0_23] : memref<2x4x32xf32, #tpu.memory_space<vmem>>, vector<1x4x32xf32>
    %65 = vector.shape_cast %64 : vector<1x4x32xf32> to vector<4x32xf32>
    %c1_24 = arith.constant 1 : index
    %c0_25 = arith.constant 0 : index
    %c0_26 = arith.constant 0 : index
    %66 = vector.load %arg1[%c1_24, %c0_25, %c0_26] : memref<2x4x32xf32, #tpu.memory_space<vmem>>, vector<1x4x32xf32>
    %67 = vector.shape_cast %66 : vector<1x4x32xf32> to vector<4x32xf32>
    %68 = arith.mulf %65, %67 : vector<4x32xf32>
    %cst_27 = arith.constant dense<0.000000e+00> : vector<4xf32>
    %69 = vector.multi_reduction <add>, %68, %cst_27 [1] : vector<4x32xf32> to vector<4xf32>
    %70 = vector.shape_cast %69 : vector<4xf32> to vector<4x1xf32>
    %71 = arith.mulf %65, %65 : vector<4x32xf32>
    %cst_28 = arith.constant dense<0.000000e+00> : vector<4xf32>
    %72 = vector.multi_reduction <add>, %71, %cst_28 [1] : vector<4x32xf32> to vector<4xf32>
    %73 = vector.shape_cast %72 : vector<4xf32> to vector<4x1xf32>
    %74 = arith.mulf %67, %67 : vector<4x32xf32>
    %cst_29 = arith.constant dense<0.000000e+00> : vector<4xf32>
    %75 = vector.multi_reduction <add>, %74, %cst_29 [1] : vector<4x32xf32> to vector<4xf32>
    %76 = vector.shape_cast %75 : vector<4xf32> to vector<4x1xf32>
    %77 = arith.mulf %73, %76 : vector<4x1xf32>
    %cst_30 = arith.constant 1.000000e-24 : f32
    %78 = vector.broadcast %cst_30 : f32 to vector<4x1xf32>
    %79 = arith.maximumf %77, %78 : vector<4x1xf32>
    %80 = math.rsqrt %79 : vector<4x1xf32>
    %81 = arith.mulf %70, %80 : vector<4x1xf32>
    %cst_31 = arith.constant -0.999989986 : f32
    %cst_32 = arith.constant 0.999989986 : f32
    %82 = vector.broadcast %cst_31 : f32 to vector<4x1xf32>
    %83 = arith.maximumf %82, %81 : vector<4x1xf32>
    %84 = vector.broadcast %cst_32 : f32 to vector<4x1xf32>
    %85 = arith.minimumf %84, %83 : vector<4x1xf32>
    %86 = arith.mulf %85, %85 : vector<4x1xf32>
    %cst_33 = arith.constant 1.000000e+00 : f32
    %87 = vector.broadcast %cst_33 : f32 to vector<4x1xf32>
    %88 = arith.subf %87, %86 : vector<4x1xf32>
    %89 = math.sqrt %88 : vector<4x1xf32>
    %90 = math.atan2 %89, %85 : vector<4x1xf32>
    %91 = vector.extract_strided_slice %9 {offsets = [0, 0, 0], sizes = [1, 4, 1], strides = [1, 1, 1]} : vector<2x4x1xi32> to vector<1x4x1xi32>
    %92 = vector.shape_cast %91 : vector<1x4x1xi32> to vector<4x1xi32>
    %93 = vector.extract_strided_slice %9 {offsets = [1, 0, 0], sizes = [1, 4, 1], strides = [1, 1, 1]} : vector<2x4x1xi32> to vector<1x4x1xi32>
    %94 = vector.shape_cast %93 : vector<1x4x1xi32> to vector<4x1xi32>
    %95 = arith.cmpi eq, %92, %94 : vector<4x1xi32>
    %96 = arith.andi %95, %8 : vector<4x1xi1>
    %97 = vector.extract_strided_slice %9 {offsets = [0, 0, 0], sizes = [1, 4, 1], strides = [1, 1, 1]} : vector<2x4x1xi32> to vector<1x4x1xi32>
    %98 = vector.shape_cast %97 : vector<1x4x1xi32> to vector<4x1xi32>
    %99 = vector.extract_strided_slice %9 {offsets = [1, 0, 0], sizes = [1, 4, 1], strides = [1, 1, 1]} : vector<2x4x1xi32> to vector<1x4x1xi32>
    %100 = vector.shape_cast %99 : vector<1x4x1xi32> to vector<4x1xi32>
    %101 = arith.cmpi ne, %98, %100 : vector<4x1xi32>
    %102 = arith.andi %101, %8 : vector<4x1xi1>
    %cst_34 = arith.constant 5.000000e-01 : f32
    %103 = vector.broadcast %cst_34 : f32 to vector<4x1xf32>
    %104 = arith.subf %103, %90 : vector<4x1xf32>
    %cst_35 = arith.constant 0.000000e+00 : f32
    %105 = vector.broadcast %cst_35 : f32 to vector<4x1xf32>
    %106 = arith.maximumf %104, %105 : vector<4x1xf32>
    %c0_36 = arith.constant 0 : index
    %107 = memref.load %arg5[%c0_36] : memref<5xf32, #tpu.memory_space<smem>>
    %108 = arith.addf %107, %63 : f32
    %c0_37 = arith.constant 0 : index
    %109 = memref.load %arg5[%c0_37] : memref<5xf32, #tpu.memory_space<smem>>
    memref.store %108, %arg5[%c0_37] : memref<5xf32, #tpu.memory_space<smem>>
    %c1_38 = arith.constant 1 : index
    %110 = memref.load %arg5[%c1_38] : memref<5xf32, #tpu.memory_space<smem>>
    %111 = arith.mulf %90, %90 : vector<4x1xf32>
    %cst_39 = arith.constant 0.000000e+00 : f32
    %112 = vector.broadcast %cst_39 : f32 to vector<4x1xf32>
    %113 = arith.select %96, %111, %112 : vector<4x1xi1>, vector<4x1xf32>
    %114 = vector.shape_cast %113 : vector<4x1xf32> to vector<1x4x1xf32>
    %cst_40 = arith.constant dense<0.000000e+00> : vector<1xf32>
    %115 = vector.multi_reduction <add>, %114, %cst_40 [1, 2] : vector<1x4x1xf32> to vector<1xf32>
    %116 = vector.shape_cast %115 : vector<1xf32> to vector<1x1x1xf32>
    %117 = vector.extract %116[0, 0, 0] : f32 from vector<1x1x1xf32>
    %118 = arith.addf %110, %117 : f32
    %c1_41 = arith.constant 1 : index
    %119 = memref.load %arg5[%c1_41] : memref<5xf32, #tpu.memory_space<smem>>
    memref.store %118, %arg5[%c1_41] : memref<5xf32, #tpu.memory_space<smem>>
    %c2 = arith.constant 2 : index
    %120 = memref.load %arg5[%c2] : memref<5xf32, #tpu.memory_space<smem>>
    %121 = arith.mulf %106, %106 : vector<4x1xf32>
    %cst_42 = arith.constant 0.000000e+00 : f32
    %122 = vector.broadcast %cst_42 : f32 to vector<4x1xf32>
    %123 = arith.select %102, %121, %122 : vector<4x1xi1>, vector<4x1xf32>
    %124 = vector.shape_cast %123 : vector<4x1xf32> to vector<1x4x1xf32>
    %cst_43 = arith.constant dense<0.000000e+00> : vector<1xf32>
    %125 = vector.multi_reduction <add>, %124, %cst_43 [1, 2] : vector<1x4x1xf32> to vector<1xf32>
    %126 = vector.shape_cast %125 : vector<1xf32> to vector<1x1x1xf32>
    %127 = vector.extract %126[0, 0, 0] : f32 from vector<1x1x1xf32>
    %128 = arith.addf %120, %127 : f32
    %c2_44 = arith.constant 2 : index
    %129 = memref.load %arg5[%c2_44] : memref<5xf32, #tpu.memory_space<smem>>
    memref.store %128, %arg5[%c2_44] : memref<5xf32, #tpu.memory_space<smem>>
    %c3 = arith.constant 3 : index
    %130 = memref.load %arg5[%c3] : memref<5xf32, #tpu.memory_space<smem>>
    %131 = arith.extui %96 : vector<4x1xi1> to vector<4x1xi32>
    %132 = arith.sitofp %131 : vector<4x1xi32> to vector<4x1xf32>
    %133 = vector.shape_cast %132 : vector<4x1xf32> to vector<1x4x1xf32>
    %cst_45 = arith.constant dense<0.000000e+00> : vector<1xf32>
    %134 = vector.multi_reduction <add>, %133, %cst_45 [1, 2] : vector<1x4x1xf32> to vector<1xf32>
    %135 = vector.shape_cast %134 : vector<1xf32> to vector<1x1x1xf32>
    %136 = vector.extract %135[0, 0, 0] : f32 from vector<1x1x1xf32>
    %137 = arith.addf %130, %136 : f32
    %c3_46 = arith.constant 3 : index
    %138 = memref.load %arg5[%c3_46] : memref<5xf32, #tpu.memory_space<smem>>
    memref.store %137, %arg5[%c3_46] : memref<5xf32, #tpu.memory_space<smem>>
    %c4 = arith.constant 4 : index
    %139 = memref.load %arg5[%c4] : memref<5xf32, #tpu.memory_space<smem>>
    %140 = arith.extui %102 : vector<4x1xi1> to vector<4x1xi32>
    %141 = arith.sitofp %140 : vector<4x1xi32> to vector<4x1xf32>
    %142 = vector.shape_cast %141 : vector<4x1xf32> to vector<1x4x1xf32>
    %cst_47 = arith.constant dense<0.000000e+00> : vector<1xf32>
    %143 = vector.multi_reduction <add>, %142, %cst_47 [1, 2] : vector<1x4x1xf32> to vector<1xf32>
    %144 = vector.shape_cast %143 : vector<1xf32> to vector<1x1x1xf32>
    %145 = vector.extract %144[0, 0, 0] : f32 from vector<1x1x1xf32>
    %146 = arith.addf %139, %145 : f32
    %c4_48 = arith.constant 4 : index
    %147 = memref.load %arg5[%c4_48] : memref<5xf32, #tpu.memory_space<smem>>
    memref.store %146, %arg5[%c4_48] : memref<5xf32, #tpu.memory_space<smem>>
    %c0_i32_49 = arith.constant 0 : i32
    %148 = arith.cmpi eq, %arg0, %c0_i32_49 : i32
    %149 = arith.extui %148 : i1 to i32
    %c0_i32_50 = arith.constant 0 : i32
    %150 = arith.cmpi ne, %149, %c0_i32_50 : i32
    scf.if %150 {
      %c0_51 = arith.constant 0 : index
      %151 = memref.load %arg5[%c0_51] : memref<5xf32, #tpu.memory_space<smem>>
      %cst_52 = arith.constant 8.000000e+00 : f32
      %152 = arith.divf %151, %cst_52 : f32
      %c3_53 = arith.constant 3 : index
      %153 = memref.load %arg5[%c3_53] : memref<5xf32, #tpu.memory_space<smem>>
      %c4_54 = arith.constant 4 : index
      %154 = memref.load %arg5[%c4_54] : memref<5xf32, #tpu.memory_space<smem>>
      %cst_55 = arith.constant 0.000000e+00 : f32
      %155 = arith.cmpf ogt, %153, %cst_55 : f32
      %c1_56 = arith.constant 1 : index
      %156 = memref.load %arg5[%c1_56] : memref<5xf32, #tpu.memory_space<smem>>
      %cst_57 = arith.constant 1.000000e+00 : f32
      %157 = arith.maximumf %153, %cst_57 : f32
      %158 = arith.divf %156, %157 : f32
      %cst_58 = arith.constant 0.000000e+00 : f32
      %159 = arith.select %155, %158, %cst_58 : f32
      %cst_59 = arith.constant 0.000000e+00 : f32
      %160 = arith.cmpf ogt, %154, %cst_59 : f32
      %c2_60 = arith.constant 2 : index
      %161 = memref.load %arg5[%c2_60] : memref<5xf32, #tpu.memory_space<smem>>
      %cst_61 = arith.constant 1.000000e+00 : f32
      %162 = arith.maximumf %154, %cst_61 : f32
      %163 = arith.divf %161, %162 : f32
      %cst_62 = arith.constant 0.000000e+00 : f32
      %164 = arith.select %160, %163, %cst_62 : f32
      %165 = arith.addf %159, %164 : f32
      %cst_63 = arith.constant 1.000000e-01 : f32
      %166 = arith.mulf %cst_63, %165 : f32
      %167 = arith.addf %152, %166 : f32
      %c0_64 = arith.constant 0 : index
      %c0_65 = arith.constant 0 : index
      %168 = memref.load %arg4[%c0_64, %c0_65] : memref<1x1xf32, #tpu.memory_space<smem>>
      memref.store %167, %arg4[%c0_64, %c0_65] : memref<1x1xf32, #tpu.memory_space<smem>>
    } else {
    }
    return
  }
  func.func @transform_0(%arg0: i32) -> (i32, i32, i32) {
    %c0_i32 = arith.constant 0 : i32
    %c0_i32_0 = arith.constant 0 : i32
    %c0_i32_1 = arith.constant 0 : i32
    return %c0_i32, %arg0, %c0_i32_0 : i32, i32, i32
  }
  func.func @transform_1(%arg0: i32) -> (i32, i32, i32) {
    %c0_i32 = arith.constant 0 : i32
    %c0_i32_0 = arith.constant 0 : i32
    %c0_i32_1 = arith.constant 0 : i32
    return %c0_i32, %arg0, %c0_i32_0 : i32, i32, i32
  }
  func.func @transform_2(%arg0: i32) -> (i32, i32, i32) {
    %c0_i32 = arith.constant 0 : i32
    %c0_i32_0 = arith.constant 0 : i32
    %c0_i32_1 = arith.constant 0 : i32
    return %c0_i32, %arg0, %c0_i32_0 : i32, i32, i32
  }
  func.func @transform_3(%arg0: i32) -> (i32, i32) {
    %c0_i32 = arith.constant 0 : i32
    %c0_i32_0 = arith.constant 0 : i32
    %c0_i32_1 = arith.constant 0 : i32
    return %c0_i32, %c0_i32_0 : i32, i32
  }
}

</mosaic_0001>

<bundles_post_ra>
// kernel: tpu_custom_call.1
= control target key start
LH: loop header
LB: loop body
LE: loop exit
PB: predicated region body
PF: predicated region fallthrough
CT: control target
= control target key end

     0   :  { %8 = vsyncpa [#allocation4], 0  ;;  %s533_s0 = inlined_call_operand.vmem [shape: f32[2,4,32], index: 0, kind: input, shape index: {}]   ;;  %s534_s1 = inlined_call_operand.hbm [shape: f32[2,4,16], index: 1, kind: input, shape index: {}]   ;;  %s535_s2 = inlined_call_operand.vmem [shape: s32[2,4,1], index: 2, kind: input, shape index: {}]   ;;  %s536_s3 = inlined_call_operand.hbm [shape: f32[1,1], index: 3, kind: output, shape index: {}]  }
   0x1   :  { %9 = vsyncpa [#allocation5], 0  ;;  %s410_s12 = smov [#allocation3]   ;;  %s374_s16 = scalar_lea.hbm %s534_s1, 128 }
   0x2   :  { %s17_s13 = sshll.u32 %s410_s12, 4  ;;  %p375_p0 = scmp.ne.s32.totalorder %s534_s1, %s374_s16  ;;  %s18_s13 = int_to_ptr.vmem [resolvable:$true] %s17_s13 }
   0x3   :  { %p378_p1 = scmp.lt.u32.totalorder %s374_s16, %s534_s1 }
   0x5   :  { %p380_p2 = pnand %p378_p1, %p375_p0 }
   0x7   :  { %383 = shalt.err (!%p380_p2)
}
   0x8   :  { %s384_s21 = scalar_lea.vmem %s18_s13, 128  ;;  %p389_p4 = scmp.lt.s32.totalorder %s18_s13, %s18_s13 }
   0x9   :  { %p385_p3 = scmp.ne.s32.totalorder %s18_s13, %s384_s21  ;;  %p390_p5 = scmp.lt.s32.totalorder %s384_s21, %s384_s21 }
   0xb   :  { %p391_p6 = por %p390_p5, %p389_p4 }
   0xd   :  { %p392_p7 = pnand %p391_p6, %p385_p3 }
   0xf   :  { %395 = shalt.err (!%p392_p7)
}
  0x10   :  { %s411_s22 = smov 64   ;;  %s412_s23 = smov 4  }
  0x11   :  { %23 = dma.hbm_to_vmem [thread:$0]  %s534_s1, 128, %s18_s13, [#allocation4], %s411_s22, %s411_s22, %s412_s23  }
  0x12   :  { %406 = dma.done.wait [#allocation4], 128  }
  0x13   :  { %407 = vsyncadd [#allocation4], 4294967168  ;;  %v413_v0 = vmov 0   ;;  %vm52_vm0 = vcmask 125952   ;;  %vm126_vm1 = vcmask 257024   ;;  %v44_v22 = vlaneseq  ;;  %s416_s10 = smov 1.0  }
  0x14   :  { %354 = vset.pattern.permute.xlu1 %v413_v0  ;;  %355 = vset.pattern.permute.xlu0 %v413_v0  ;;  %v51_v1 = vld [vmem:[#allocation3] sm:$0xf]  ;;  %v89_v3 = vld [vmem:[#allocation3 + $0x4] sm:$0xf]  ;;  %vm76_vm9 = vcmask 3072   ;;  %v414_v53 = vmov 0.0  }
  0x15   :  { %v122_v2 = vld [vmem:[%s533_s0] sm:$0xf]  ;;  %v53_v4 = vsel %vm52_vm0, %v51_v1, -inf  ;;  %v318_v6 = vld [vmem:[%s533_s0 + $0x4] sm:$0xf]  ;;  %v90_v9 = vsel %vm52_vm0, %v89_v3, -inf }
  0x16   :  { %v130_v5 = vmul.f32 %v122_v2, %v122_v2  ;;  %54 = vmax.xlane.f32.xlu1 %v53_v4  ;;  %v134_v7 = vmul.f32 %v318_v6, %v318_v6  ;;  %v125_v11 = vmul.f32 %v318_v6, %v122_v2  ;;  %v464_v13 = vld [vmem:[%s535_s2] sm:$0xf]  ;;  %v50_v14 = vld [vmem:[%s535_s2 + $0x4] sm:$0xf]  ;;  %v63_v26 = vand.u32 127, %v44_v22  ;;  %s396_s24 = scalar_lea.hbm %s536_s3, 16 }
  0x17   :  { %v478_v45 = vshrl.u32 %v44_v22, 7  ;;  %vm202_vm6 = vcmp.ne.s32.totalorder %v464_v13, %v50_v14  ;;  %vm200_vm10 = vcmp.eq.s32.totalorder %v464_v13, %v50_v14  ;;  %v415_v22 = vmov 0.7853982   ;;  %p397_p10 = scmp.ne.s32.totalorder %s536_s3, %s396_s24  ;;  %p400_p11 = scmp.lt.u32.totalorder %s396_s24, %s536_s3 }
  0x18   :  { %v131_v8 = vsel %vm126_vm1, %v130_v5, 0.0  ;;  %v135_v10 = vsel %vm126_vm1, %v134_v7, 0.0  ;;  %v127_v12 = vsel %vm126_vm1, %v125_v11, 0.0 }
  0x19   :  { %132 = vadd.xlane.f32.xlu0 %v131_v8  ;;  %vm48_vm7 = vcmp.lt.s32.totalorder %v478_v45, 4  ;;  %p402_p12 = pnand %p400_p11, %p397_p10 }
  0x1a   :  { %91 = vmax.xlane.f32.xlu1 %v90_v9  ;;  %vm485_vm8 = vmand %vm202_vm6, %vm48_vm7 }
  0x1b   :  { %v325_v54 = vsel %vm485_vm8, 1.0, %v414_v53  ;;  %vm495_vm11 = vmand %vm200_vm10, %vm48_vm7 }
  0x1c   :  { %v261_v55 = vsel %vm76_vm9, %v325_v54, 0.0  ;;  %v501_v57 = vsel %vm495_vm11, 1.0, %v414_v53 }
  0x1d   :  { %136 = vadd.xlane.f32.xlu0 %v135_v10 }
  0x21   :  { %128 = vadd.xlane.f32.xlu0 %v127_v12 }
  0x2b   :  { %65 = vperm.xlu1 %354, %v464_v13  }
  0x37   :  { %100 = vperm.xlu0 %355, %v50_v14  }
  0xa3   :  { %v55_v15 = vpop.xlane.xlu1 %54 }
  0xa4   :  { %v56_v16 = vsub.f32 %v51_v1, %v55_v15 }
  0xa6   :  { %v133_v17 = vpop.xlane.xlu0 %132  ;;  %v57_v18 = vmul.f32 1.442695, %v56_v16 }
  0xa7   :  { %v92_v19 = vpop.xlane.xlu1 %91 }
  0xa8   :  { %356 = vpow2.f32 %v57_v18  ;;  %v93_v20 = vsub.f32 %v89_v3, %v92_v19 }
  0xaa   :  { %v137_v21 = vpop.xlane.xlu0 %136  ;;  %v94_v23 = vmul.f32 1.442695, %v93_v20 }
  0xab   :  { %v138_v24 = vmul.f32 %v137_v21, %v133_v17  ;;  %v66_v27 = vpop.permute.xlu1 %65 }
  0xac   :  { %358 = vpow2.f32 %v94_v23  ;;  %vm67_vm2 = vcmp.eq.s32.totalorder %v66_v27, %v63_v26 }
  0xad   :  { %v139_v25 = vmax.f32 %v138_v24, 1e-24  ;;  %v68_v31 = vsel %vm67_vm2, %v56_v16, 0.0 }
  0xae   :  { %v129_v28 = vpop.xlane.xlu0 %128  ;;  %v69_v35 = vsel %vm52_vm0, %v68_v31, 0.0 }
  0xaf   :  { %360 = vrsqrt.f32 %v139_v25 }
  0xb2   :  { %v357_v29 = vpop.eup %356 }
  0xb3   :  { %v59_v30 = vsel %vm52_vm0, %v357_v29, 0.0 }
  0xb4   :  { %60 = vadd.xlane.f32.xlu1 %v59_v30 }
  0xb6   :  { %v101_v32 = vpop.permute.xlu0 %100  ;;  %v359_v33 = vpop.eup %358 }
  0xb7   :  { %vm102_vm3 = vcmp.eq.s32.totalorder %v101_v32, %v63_v26  ;;  %v96_v34 = vsel %vm52_vm0, %v359_v33, 0.0 }
  0xb8   :  { %97 = vadd.xlane.f32.xlu0 %v96_v34  ;;  %70 = vadd.xlane.f32.xlu1 %v69_v35  ;;  %v103_v37 = vsel %vm102_vm3, %v93_v20, 0.0 }
  0xb9   :  { %v361_v36 = vpop.eup %360  ;;  %v104_v40 = vsel %vm52_vm0, %v103_v37, 0.0 }
  0xba   :  { %v141_v38 = vmul.f32 %v361_v36, %v129_v28 }
  0xbc   :  { %v473_v39 = vclamps-f32 %v141_v38, 0.99999  ;;  %105 = vadd.xlane.f32.xlu1 %v104_v40  ;;  %262 = vadd.xlane.f32.xlu0 %v261_v55 }
  0xbe   :  { %v144_v41 = vmul.f32 %v473_v39, %v473_v39  ;;  %v153_v49 = vand.u32 2147483647, %v473_v39  ;;  %vm183_vm13 = vcmp.lt.s32.totalorder %v473_v39, 0  ;;  %vm180_vm15 = vcmp.lt.f32.partialorder %v473_v39, 0.0 }
  0xbf   :  { %v184_v19 = vsel %vm183_vm13, 3.1415927, %v414_v53  ;;  %vm187_vm2 = vcmp.ne.f32.partialorder %v473_v39, %v473_v39  ;;  %v192_v23 = vsel %vm180_vm15, 2.3561945, %v415_v22 }
  0xc0   :  { %v145_v42 = vsub.f32 1.0, %v144_v41 }
  0xc2   :  { %362 = vrsqrt.f32 %v145_v42  ;;  %vm148_vm4 = vcmp.eq.f32.partialorder %v145_v42, inf  ;;  %v151_v46 = vand.u32 2147483648, %v145_v42  ;;  %vm150_vm5 = vcmp.eq.f32.partialorder %v145_v42, 0.0 }
  0xcc   :  { %v363_v43 = vpop.eup %362 }
  0xcd   :  { %v147_v44 = vmul.f32 %v363_v43, %v145_v42 }
  0xcf   :  { %v149_v47 = vsel %vm148_vm4, %v145_v42, %v147_v44  ;;  %vm193_vm4 = vcmp.eq.s32.totalorder %v153_v49, inf }
  0xd0   :  { %v152_v48 = vsel %vm150_vm5, %v151_v46, %v149_v47 }
  0xd1   :  { %v154_v50 = vand.u32 2147483647, %v152_v48  ;;  %vm188_vm14 = vcmp.ne.f32.partialorder %v152_v48, %v152_v48  ;;  %vm185_vm1 = vcmp.eq.f32.partialorder %v152_v48, 0.0  ;;  %v198_v26 = vand.u32 2147483648, %v152_v48 }
  0xd2   :  { %vm189_vm3 = vmor %vm187_vm2, %vm188_vm14 }
  0xd3   :  { %v156_v51 = vmax.f32 %v153_v49, %v154_v50  ;;  %v155_v58 = vmin.f32 %v153_v49, %v154_v50  ;;  %vm177_vm12 = vcmp.gt.f32.partialorder %v154_v50, %v153_v49  ;;  %vm194_vm0 = vcmp.eq.s32.totalorder %v154_v50, inf }
  0xd4   :  { %vm195_vm5 = vmand %vm193_vm4, %vm194_vm0 }
  0xd5   :  { %364 = vrcp.f32 %v156_v51  ;;  %v245_v51 = vsel %vm76_vm9, %v501_v57, 0.0 }
  0xdf   :  { %v365_v59 = vpop.eup %364 }
  0xe0   :  { %v158_v60 = vmul.f32 %v365_v59, %v155_v58 }
  0xe2   :  { %v159_v61 = vmul.f32 %v158_v60, %v158_v60 }
  0xe4   :  { %v160_v62 = vmul.f32 0.002785687, %v159_v61 }
  0xe6   :  { %v161_v63 = vadd.f32 -0.015866, %v160_v62 }
  0xe8   :  { %v162_v0 = vmul.f32 %v161_v63, %v159_v61 }
  0xea   :  { %v163_v1 = vadd.f32 0.04247222, %v162_v0 }
  0xec   :  { %v164_v2 = vmul.f32 %v163_v1, %v159_v61 }
  0xee   :  { %v165_v3 = vadd.f32 -0.074975304, %v164_v2 }
  0xf0   :  { %v166_v4 = vmul.f32 %v165_v3, %v159_v61 }
  0xf2   :  { %v167_v5 = vadd.f32 0.1064488, %v166_v4 }
  0xf4   :  { %v168_v6 = vmul.f32 %v167_v5, %v159_v61 }
  0xf6   :  { %v169_v7 = vadd.f32 -0.14207031, %v168_v6 }
  0xf8   :  { %v170_v8 = vmul.f32 %v169_v7, %v159_v61 }
  0xfa   :  { %v171_v9 = vadd.f32 0.19993454, %v170_v8 }
  0xfc   :  { %v172_v10 = vmul.f32 %v171_v9, %v159_v61 }
  0xfe   :  { %v173_v11 = vadd.f32 -0.33333147, %v172_v10 }
 0x100   :  { %v174_v12 = vmul.f32 %v173_v11, %v159_v61 }
 0x102   :  { %v175_v13 = vmul.f32 %v174_v12, %v158_v60 }
 0x104   :  { %v176_v14 = vadd.f32 %v175_v13, %v158_v60 }
 0x106   :  { %v178_v15 = vsub.f32 1.5707964, %v176_v14 }
 0x108   :  { %v179_v16 = vsel %vm177_vm12, %v178_v15, %v176_v14 }
 0x109   :  { %v181_v17 = vsub.f32 3.1415927, %v179_v16 }
 0x10b   :  { %v182_v18 = vsel %vm180_vm15, %v181_v17, %v179_v16 }
 0x10c   :  { %v186_v20 = vsel %vm185_vm1, %v184_v19, %v182_v18 }
 0x10d   :  { %v190_v21 = vsel %vm189_vm3, nan, %v186_v20 }
 0x10e   :  { %v196_v24 = vsel %vm195_vm5, %v192_v23, %v190_v21 }
 0x10f   :  { %v197_v25 = vand.u32 2147483647, %v196_v24 }
 0x111   :  { %v199_v27 = vor.u32 %v198_v26, %v197_v25 }
 0x113   :  { %v211_v28 = vmul.f32 %v199_v27, %v199_v27  ;;  %v204_v29 = vsub.f32 0.5, %v199_v27 }
 0x115   :  { %v212_v30 = vsel %vm495_vm11, %v211_v28, 0.0  ;;  %v205_v31 = vmax.f32 %v204_v29, 0.0 }
 0x116   :  { %v213_v32 = vsel %vm76_vm9, %v212_v30, 0.0 }
 0x117   :  { %214 = vadd.xlane.f32.xlu1 %v213_v32  ;;  %v227_v33 = vmul.f32 %v205_v31, %v205_v31 }
 0x119   :  { %v228_v34 = vsel %vm485_vm8, %v227_v33, 0.0 }
 0x11a   :  { %v229_v35 = vsel %vm76_vm9, %v228_v34, 0.0 }
 0x11b   :  { %230 = vadd.xlane.f32.xlu1 %v229_v35 }
 0x141   :  { %v61_v36 = vpop.xlane.xlu1 %60 }
 0x142   :  { %366 = vlog2.f32 %v61_v36 }
 0x145   :  { %v98_v37 = vpop.xlane.xlu0 %97  ;;  %v71_v39 = vpop.xlane.xlu1 %70 }
 0x146   :  { %368 = vlog2.f32 %v98_v37 }
 0x149   :  { %v106_v46 = vpop.xlane.xlu1 %105  ;;  %v263_v56 = vpop.xlane.xlu0 %262 }
 0x14a   :  { %v264_v60 = vrot.slane %v263_v56, 4 }
 0x14c   :  { %v367_v38 = vpop.eup %366  ;;  %v265_v0 = vadd.f32 %v264_v60, %v263_v56 }
 0x14d   :  { %v73_v40 = vmul.f32 0.6931472, %v367_v38 }
 0x14e   :  { %v266_v6 = vrot.slane %v265_v0, 2 }
 0x14f   :  { %v74_v41 = vsub.f32 %v73_v40, %v71_v39 }
 0x150   :  { %v369_v42 = vpop.eup %368  ;;  %v267_v16 = vadd.f32 %v266_v6, %v265_v0 }
 0x151   :  { %v108_v43 = vmul.f32 0.6931472, %v369_v42  ;;  %v75_v44 = vsel %vm48_vm7, %v74_v41, 0.0 }
 0x152   :  { %v77_v47 = vsel %vm76_vm9, %v75_v44, 0.0  ;;  %v268_v24 = vrot.slane %v267_v16, 1 }
 0x153   :  { %v109_v48 = vsub.f32 %v108_v43, %v106_v46  ;;  %78 = vadd.xlane.f32.xlu1 %v77_v47 }
 0x154   :  { %v269_v28 = vadd.f32 %v268_v24, %v267_v16 }
 0x155   :  { %v110_v49 = vsel %vm48_vm7, %v109_v48, 0.0 }
 0x156   :  { %v111_v50 = vsel %vm76_vm9, %v110_v49, 0.0 }
 0x157   :  { %112 = vadd.xlane.f32.xlu1 %v111_v50 }
 0x15b   :  { %246 = vadd.xlane.f32.xlu1 %v245_v51 }
 0x1a4   :  { %v215_v52 = vpop.xlane.xlu1 %214 }
 0x1a5   :  { %v216_v54 = vrot.slane %v215_v52, 4 }
 0x1a7   :  { %v217_v58 = vadd.f32 %v216_v54, %v215_v52 }
 0x1a8   :  { %v231_v53 = vpop.xlane.xlu1 %230 }
 0x1a9   :  { %v232_v55 = vrot.slane %v231_v53, 4  ;;  %v218_v45 = vrot.slane %v217_v58, 2 }
 0x1ab   :  { %v233_v61 = vadd.f32 %v232_v55, %v231_v53  ;;  %v219_v8 = vadd.f32 %v218_v45, %v217_v58 }
 0x1ad   :  { %v234_v2 = vrot.slane %v233_v61, 2  ;;  %v220_v17 = vrot.slane %v219_v8, 1 }
 0x1af   :  { %v235_v12 = vadd.f32 %v234_v2, %v233_v61  ;;  %v221_v23 = vadd.f32 %v220_v17, %v219_v8 }
 0x1b1   :  { %v236_v20 = vrot.slane %v235_v12, 1 }
 0x1b3   :  { %v237_v25 = vadd.f32 %v236_v20, %v235_v12 }
 0x1e0   :  { %v79_v59 = vpop.xlane.xlu1 %78 }
 0x1e1   :  { %v80_v62 = vrot.slane %v79_v59, 4 }
 0x1e3   :  { %v81_v63 = vadd.f32 %v80_v62, %v79_v59 }
 0x1e4   :  { %v113_v1 = vpop.xlane.xlu1 %112 }
 0x1e5   :  { %v82_v3 = vrot.slane %v81_v63, 2  ;;  %v114_v4 = vrot.slane %v113_v1, 4 }
 0x1e7   :  { %v115_v5 = vadd.f32 %v114_v4, %v113_v1  ;;  %v83_v57 = vadd.f32 %v82_v3, %v81_v63 }
 0x1e8   :  { %v247_v7 = vpop.xlane.xlu1 %246 }
 0x1e9   :  { %v116_v9 = vrot.slane %v115_v5, 2  ;;  %v248_v10 = vrot.slane %v247_v7, 4  ;;  %v84_v11 = vrot.slane %v83_v57, 1 }
 0x1eb   :  { %v249_v13 = vadd.f32 %v248_v10, %v247_v7  ;;  %v85_v14 = vadd.f32 %v84_v11, %v83_v57  ;;  %v117_v15 = vadd.f32 %v116_v9, %v115_v5 }
 0x1ed   :  { %v250_v18 = vrot.slane %v249_v13, 2  ;;  %330 = vpush %v85_v14  ;;  %v118_v19 = vrot.slane %v117_v15, 1 }
 0x1ef   :  { %v251_v21 = vadd.f32 %v250_v18, %v249_v13  ;;  %v119_v22 = vadd.f32 %v118_v19, %v117_v15 }
 0x1f1   :  { %332 = vpush %v119_v22  ;;  %v252_v26 = vrot.slane %v251_v21, 1 }
 0x1f2   :  { %334 = vpush %v221_v23 }
 0x1f3   :  { %336 = vpush %v237_v25  ;;  %v253_v27 = vadd.f32 %v252_v26, %v251_v21 }
 0x1f5   :  { %338 = vpush %v253_v27 }
 0x1f6   :  { %340 = vpush %v269_v28 }
 0x21e   :  { %s331_s2 = spop %330 }
 0x222   :  { %s333_s5 = spop %332 }
 0x223   :  { %s121_s6 = sadd.f32 %s333_s5, %s331_s2  ;;  %s335_s7 = spop %334 }
 0x224   :  { %s337_s8 = spop %336 }
 0x225   :  { %s280_s19 = smul.f32 0.125, %s121_s6 }
 0x226   :  { %s339_s9 = spop %338 }
 0x227   :  { %s285_s11 = smax.f32 %s416_s10, %s339_s9  ;;  %s341_s12 = spop %340 }
 0x228   :  { %v286_v29 = vstv %s285_s11  ;;  %s293_s13 = smax.f32 %s416_s10, %s341_s12  ;;  %p283_p8 = scmp.gt.f32.partialorder %s339_s9, 0.0 }
 0x229   :  { %370 = vrcp.f32 %v286_v29  ;;  %v294_v30 = vstv %s293_s13  ;;  %p291_p9 = scmp.gt.f32.partialorder %s341_s12, 0.0 }
 0x22a   :  { %372 = vrcp.f32 %v294_v30 }
 0x233   :  { %v371_v31 = vpop.eup %370 }
 0x234   :  { %342 = vpush %v371_v31  ;;  %v373_v32 = vpop.eup %372 }
 0x235   :  { %344 = vpush %v373_v32 }
 0x265   :  { %s343_s14 = spop %342 }
 0x266   :  { %s289_s15 = smul.f32 %s343_s14, %s335_s7  ;;  %s345_s16 = spop %344 }
 0x267   :  { %s297_s17 = smul.f32 %s345_s16, %s337_s8 }
 0x268   :  { %s542_s15 = smov (!%p283_p8, %s289_s15), 0.0 }
 0x269   :  { %s544_s17 = smov (!%p291_p9, %s297_s17), 0.0 }
 0x26a   :  { %s299_s18 = sadd.f32 %s544_s17, %s542_s15 }
 0x26c   :  { %s300_s20 = smul.f32 0.1, %s299_s18 }
 0x26e   :  { %s301_s21 = sadd.f32 %s300_s20, %s280_s19 }
 0x270   :  { %303 = sst [smem:[#allocation6]] %s301_s21 }
 0x271   :  { %405 = shalt.err (!%p402_p12)
}
 0x272   :  { %s417_s29 = smov [#allocation6]  }
 0x273   :  { %311 = dma.smem_to_hbm %s417_s29, 16, %s536_s3, [#allocation5]  }
 0x274   :  { %408 = dma.done.wait [#allocation5], 16  }
 0x275   :  { %409 = vsyncadd [#allocation5], 4294967280 }
 0x276   :  { %315 = sfence }
 0x277   :  { %316 = vsyncpa [#allocation4], 1 }
 0x278   :  { %317 = vsyncpa [#allocation5], 1 }

</bundles_post_ra>
